<compile_context>
chip_gen: v5e
topology: v5e:2x2
jax: 0.10.0
libtpu: 0.0.40
codegen_flags: <defaults>
</compile_context>

<pallas_src>
import math

import jax
import jax.numpy as jnp
from jax.experimental import pallas as pl
from jax.experimental.pallas import tpu as pltpu


def _mlp_kernel(x_ref, w1_ref, b1_ref, w2_ref, b2_ref, w3_ref, b3_ref, o_ref):
    # x_ref : (1, tm)   batch on lanes, f32
    # w1    : (64, 1)   b1: (64, 1)            f32
    # w2    : (64, 64)  bf16 (pre-cast)  b2: (64, 1) f32
    # w3    : (64, 1)   b3: (1, 1)             f32
    # o_ref : (1, tm)   f32
    x = x_ref[...]                                                # (1, tm)

    # Layer 1: K=1 matmul is MXU-hostile -> rank-1 outer product on the VPU.
    # Cast to bf16 at the ReLU so only the 2-byte copy of h1 is materialized.
    h1 = jnp.maximum(w1_ref[...] * x + b1_ref[...], 0.0).astype(jnp.bfloat16)  # (64, tm)

    # Layer 2: the only real matmul. bf16 operands, f32 accumulation on the MXU.
    # Bias add / ReLU stay in f32 on the VPU.
    h2 = jnp.dot(w2_ref[...], h1, preferred_element_type=jnp.float32) + b2_ref[...]
    h2 = jnp.maximum(h2, 0.0)                                     # (64, tm), f32

    # Layer 3: output width 1 -> VPU multiply + sublane reduction (XLU) instead
    # of a second under-utilized MXU pass; the (1, tm) result is lane-dense.
    out = jnp.sum(w3_ref[...] * h2, axis=0, keepdims=True) + b3_ref[...]
    o_ref[...] = out.astype(o_ref.dtype)                          # (1, tm)


def _pick_tm(n, tm_max):
    """Pick the batch/lane tile.

    Large tiles amortize the ~0.35 us per-grid-step overhead; but when >= 2
    tiles of 128 lanes are available, guarantee the grid has >= 2 tiles so
    a v7x chip can shard them across both TensorCores.
    """
    n128 = -(-n // 128) * 128                   # round batch up to 128 lanes
    two_tile_tm = -(-n128 // (2 * 128)) * 128   # ~half the padded batch, /128
    return max(128, min(tm_max, two_tile_tm))


def sine_model_forward(x, params, *, tm=None, tm_max=8192, vmem_limit_bytes=None):
    """x: (N, 1) float32 -> (N, 1) float32.

    tm: batch (lane) tile (multiple of 128).  If None it is auto-picked
    (capped at tm_max, >= 2 grid tiles when possible).  N is padded up to a
    multiple of tm (padding is sliced off again), so any N works.
    """
    N = x.shape[0]
    assert x.shape == (N, 1)

    if tm is None:
        tm = _pick_tm(N, tm_max)
    assert tm % 128 == 0, "tm must be a multiple of the 128-lane width"

    w1, b1 = params["w1"], params["b1"]                  # (64, 1), (64, 1)
    w2 = params["w2"].astype(jnp.bfloat16)               # (64, 64), hoisted cast
    b2 = params["b2"]                                    # (64, 1)
    w3, b3 = params["w3"], params["b3"]                  # (64, 1), (1, 1)

    n_pad = pl.cdiv(N, tm) * tm
    # Batch-on-lanes layout: (N, 1) -> (1, n_pad), zero-padded tail.
    x_t = jnp.pad(x.astype(jnp.float32).T, ((0, 0), (0, n_pad - N)))

    grid = (n_pad // tm,)

    # Small weights/biases: full-array blocks, constant index_map (fetched once,
    # reused across all batch tiles).
    full = lambda a: pl.BlockSpec(a.shape, lambda i: (0, 0))

    cp_kwargs = dict(dimension_semantics=("parallel",))  # batch tiles shard across TCs
    if vmem_limit_bytes is not None:
        cp_kwargs["vmem_limit_bytes"] = vmem_limit_bytes

    out_t = pl.pallas_call(
        _mlp_kernel,
        out_shape=jax.ShapeDtypeStruct((1, n_pad), jnp.float32),
        grid_spec=pltpu.PrefetchScalarGridSpec(
            num_scalar_prefetch=0,
            grid=grid,
            in_specs=[
                pl.BlockSpec((1, tm), lambda i: (0, i)),        # x, lane-dense
                full(w1), full(b1),
                full(w2), full(b2),
                full(w3), full(b3),
            ],
            out_specs=pl.BlockSpec((1, tm), lambda i: (0, i)),  # out, lane-dense
        ),
        compiler_params=pltpu.CompilerParams(**cp_kwargs),
    )(x_t, w1, b1, w2, b2, w3, b3)

    return out_t[0, :N].reshape(N, 1)


def init_params(key):
    """nn.Linear default init: U(-1/sqrt(fan_in), +1/sqrt(fan_in))."""
    keys = jax.random.split(key, 6)

    def lin(kw, kb, fan_in, fan_out):
        bound = 1.0 / math.sqrt(fan_in)
        w = jax.random.uniform(kw, (fan_out, fan_in), jnp.float32, -bound, bound)
        b = jax.random.uniform(kb, (fan_out, 1), jnp.float32, -bound, bound)
        return w, b

    w1, b1 = lin(keys[0], keys[1], 1, 64)     # layer1.weight (64,1)
    w2, b2 = lin(keys[2], keys[3], 64, 64)    # layer2.weight (64,64)
    w3t, b3 = lin(keys[4], keys[5], 64, 1)    # layer3.weight (1,64)
    return {"w1": w1, "b1": b1,
            "w2": w2, "b2": b2,
            "w3": w3t.T,                      # stored as (64, 1) column
            "b3": b3}                         # (1, 1)


def _reference_forward_f32(x, p):
    """PyTorch semantics (x @ W.T + b), all-f32 reference."""
    h1 = jnp.maximum(x @ p["w1"].T + p["b1"].T, 0.0)
    h2 = jnp.maximum(h1 @ p["w2"].T + p["b2"].T, 0.0)
    return h2 @ p["w3"] + p["b3"]


def _reference_forward_kernel_numerics(x, p):
    """Mirrors the kernel's numerics (bf16 operands on the 64x64 matmul only)."""
    h1 = jnp.maximum(x * p["w1"].T + p["b1"].T, 0.0)                  # K=1: exact f32
    h2 = jnp.dot(h1.astype(jnp.bfloat16), p["w2"].T.astype(jnp.bfloat16),
                 preferred_element_type=jnp.float32) + p["b2"].T
    h2 = jnp.maximum(h2, 0.0)
    return jnp.sum(h2 * p["w3"].T, axis=1, keepdims=True) + p["b3"]   # width-1: f32 reduce


if __name__ == "__main__":
    key = jax.random.PRNGKey(0)
    kx, kp = jax.random.split(key)

    # Small demo: 500 scalar sample points (exercises the padded / ragged tail).
    # Auto-picked tm=256 -> grid of 2 tiles, so both v7x TensorCores get work.
    N = 500
    x = jax.random.uniform(kx, (N, 1), jnp.float32, -math.pi, math.pi)
    params = init_params(kp)

    out = sine_model_forward(x, params)
    out = jax.block_until_ready(out)
    assert out.shape == (N, 1)

    # Tight check vs a reference that mirrors the kernel's numerics.
    ref_bf16 = _reference_forward_kernel_numerics(x, params)
    assert jnp.allclose(out, ref_bf16, atol=1e-4, rtol=1e-4), "mismatch vs kernel-numerics reference"

    # Loose check vs the full-f32 PyTorch-semantics reference (bf16 middle matmul
    # introduces ~1e-3-scale differences).
    ref_f32 = _reference_forward_f32(x, params)
    assert jnp.allclose(out, ref_f32, atol=3e-2, rtol=3e-2), "mismatch vs f32 reference"

    print("KERNEL_OK")
</pallas_src>

<mosaic_0001>
module attributes {stable_mosaic.version = 11 : i64} {
  func.func @_mlp_kernel(%arg0: i32, %arg1: memref<1x256xf32, #tpu.memory_space<vmem>>, %arg2: memref<64x1xf32, #tpu.memory_space<vmem>>, %arg3: memref<64x1xf32, #tpu.memory_space<vmem>>, %arg4: memref<64x64xbf16, #tpu.memory_space<vmem>>, %arg5: memref<64x1xf32, #tpu.memory_space<vmem>>, %arg6: memref<64x1xf32, #tpu.memory_space<vmem>>, %arg7: memref<1x1xf32, #tpu.memory_space<vmem>>, %arg8: memref<1x256xf32, #tpu.memory_space<vmem>>) attributes {dimension_semantics = [#tpu.dimension_semantics<parallel>], iteration_bounds = array<i64: 2>, scalar_prefetch = 0 : i64, scratch_operands = 0 : i64, tpu.core_type = #tpu.core_type<tc>, window_params = [{transform_indices = @transform_0, window_bounds = array<i64: 1, 256>}, {pipeline_mode = #tpu.pipeline_mode<synchronous>, transform_indices = @transform_1, window_bounds = array<i64: 64, 1>}, {pipeline_mode = #tpu.pipeline_mode<synchronous>, transform_indices = @transform_2, window_bounds = array<i64: 64, 1>}, {pipeline_mode = #tpu.pipeline_mode<synchronous>, transform_indices = @transform_3, window_bounds = array<i64: 64, 64>}, {pipeline_mode = #tpu.pipeline_mode<synchronous>, transform_indices = @transform_4, window_bounds = array<i64: 64, 1>}, {pipeline_mode = #tpu.pipeline_mode<synchronous>, transform_indices = @transform_5, window_bounds = array<i64: 64, 1>}, {pipeline_mode = #tpu.pipeline_mode<synchronous>, transform_indices = @transform_6, window_bounds = array<i64: 1, 1>}, {transform_indices = @transform_7, window_bounds = array<i64: 1, 256>}]} {
    %c0 = arith.constant 0 : index
    %c0_0 = arith.constant 0 : index
    %0 = vector.load %arg1[%c0, %c0_0] : memref<1x256xf32, #tpu.memory_space<vmem>>, vector<1x256xf32>
    %c0_1 = arith.constant 0 : index
    %c0_2 = arith.constant 0 : index
    %1 = vector.load %arg2[%c0_1, %c0_2] : memref<64x1xf32, #tpu.memory_space<vmem>>, vector<64x1xf32>
    %2 = vector.broadcast %1 : vector<64x1xf32> to vector<64x256xf32>
    %3 = vector.broadcast %0 : vector<1x256xf32> to vector<64x256xf32>
    %4 = arith.mulf %2, %3 : vector<64x256xf32>
    %c0_3 = arith.constant 0 : index
    %c0_4 = arith.constant 0 : index
    %5 = vector.load %arg3[%c0_3, %c0_4] : memref<64x1xf32, #tpu.memory_space<vmem>>, vector<64x1xf32>
    %6 = vector.broadcast %5 : vector<64x1xf32> to vector<64x256xf32>
    %7 = arith.addf %4, %6 : vector<64x256xf32>
    %cst = arith.constant 0.000000e+00 : f32
    %8 = vector.broadcast %cst : f32 to vector<64x256xf32>
    %9 = arith.maximumf %7, %8 : vector<64x256xf32>
    %10 = arith.truncf %9 : vector<64x256xf32> to vector<64x256xbf16>
    %c0_5 = arith.constant 0 : index
    %c0_6 = arith.constant 0 : index
    %11 = vector.load %arg4[%c0_5, %c0_6] : memref<64x64xbf16, #tpu.memory_space<vmem>>, vector<64x64xbf16>
    %cst_7 = arith.constant dense<0.000000e+00> : vector<64x256xf32>
    %12 = tpu.matmul %11, %10, %cst_7 {dimension_numbers = #tpu.dot_dimension_numbers<[1], [0], [0], [1], [0, 0, 1, 1], [], []>} : vector<64x64xbf16>, vector<64x256xbf16>, vector<64x256xf32> -> vector<64x256xf32>
    %c0_8 = arith.constant 0 : index
    %c0_9 = arith.constant 0 : index
    %13 = vector.load %arg5[%c0_8, %c0_9] : memref<64x1xf32, #tpu.memory_space<vmem>>, vector<64x1xf32>
    %14 = vector.broadcast %13 : vector<64x1xf32> to vector<64x256xf32>
    %15 = arith.addf %12, %14 : vector<64x256xf32>
    %cst_10 = arith.constant 0.000000e+00 : f32
    %16 = vector.broadcast %cst_10 : f32 to vector<64x256xf32>
    %17 = arith.maximumf %15, %16 : vector<64x256xf32>
    %c0_11 = arith.constant 0 : index
    %c0_12 = arith.constant 0 : index
    %18 = vector.load %arg6[%c0_11, %c0_12] : memref<64x1xf32, #tpu.memory_space<vmem>>, vector<64x1xf32>
    %19 = vector.broadcast %18 : vector<64x1xf32> to vector<64x256xf32>
    %20 = arith.mulf %19, %17 : vector<64x256xf32>
    %cst_13 = arith.constant dense<0.000000e+00> : vector<256xf32>
    %21 = vector.multi_reduction <add>, %20, %cst_13 [0] : vector<64x256xf32> to vector<256xf32>
    %22 = vector.shape_cast %21 : vector<256xf32> to vector<1x256xf32>
    %c0_14 = arith.constant 0 : index
    %c0_15 = arith.constant 0 : index
    %23 = vector.load %arg7[%c0_14, %c0_15] : memref<1x1xf32, #tpu.memory_space<vmem>>, vector<1x1xf32>
    %24 = vector.broadcast %23 : vector<1x1xf32> to vector<1x256xf32>
    %25 = arith.addf %22, %24 : vector<1x256xf32>
    %c0_16 = arith.constant 0 : index
    %c0_17 = arith.constant 0 : index
    %26 = vector.load %arg8[%c0_16, %c0_17] : memref<1x256xf32, #tpu.memory_space<vmem>>, vector<1x256xf32>
    tpu.vector_store %arg8[%c0_16, %c0_17], %25 {strides = array<i32>} : memref<1x256xf32, #tpu.memory_space<vmem>>, vector<1x256xf32>,
    return
  }
  func.func @transform_0(%arg0: i32) -> (i32, i32) {
    %c0_i32 = arith.constant 0 : i32
    %c0_i32_0 = arith.constant 0 : i32
    return %c0_i32, %arg0 : i32, i32
  }
  func.func @transform_1(%arg0: i32) -> (i32, i32) {
    %c0_i32 = arith.constant 0 : i32
    %c0_i32_0 = arith.constant 0 : i32
    %c0_i32_1 = arith.constant 0 : i32
    return %c0_i32, %c0_i32_0 : i32, i32
  }
  func.func @transform_2(%arg0: i32) -> (i32, i32) {
    %c0_i32 = arith.constant 0 : i32
    %c0_i32_0 = arith.constant 0 : i32
    %c0_i32_1 = arith.constant 0 : i32
    return %c0_i32, %c0_i32_0 : i32, i32
  }
  func.func @transform_3(%arg0: i32) -> (i32, i32) {
    %c0_i32 = arith.constant 0 : i32
    %c0_i32_0 = arith.constant 0 : i32
    %c0_i32_1 = arith.constant 0 : i32
    return %c0_i32, %c0_i32_0 : i32, i32
  }
  func.func @transform_4(%arg0: i32) -> (i32, i32) {
    %c0_i32 = arith.constant 0 : i32
    %c0_i32_0 = arith.constant 0 : i32
    %c0_i32_1 = arith.constant 0 : i32
    return %c0_i32, %c0_i32_0 : i32, i32
  }
  func.func @transform_5(%arg0: i32) -> (i32, i32) {
    %c0_i32 = arith.constant 0 : i32
    %c0_i32_0 = arith.constant 0 : i32
    %c0_i32_1 = arith.constant 0 : i32
    return %c0_i32, %c0_i32_0 : i32, i32
  }
  func.func @transform_6(%arg0: i32) -> (i32, i32) {
    %c0_i32 = arith.constant 0 : i32
    %c0_i32_0 = arith.constant 0 : i32
    %c0_i32_1 = arith.constant 0 : i32
    return %c0_i32, %c0_i32_0 : i32, i32
  }
  func.func @transform_7(%arg0: i32) -> (i32, i32) {
    %c0_i32 = arith.constant 0 : i32
    %c0_i32_0 = arith.constant 0 : i32
    return %c0_i32, %arg0 : i32, i32
  }
}

</mosaic_0001>

<bundles_post_ra>
// kernel: tpu_custom_call.1
= control target key start
LH: loop header
LB: loop body
LE: loop exit
PB: predicated region body
PF: predicated region fallthrough
CT: control target
= control target key end

     0   :  { %s1196_s0 = inlined_call_operand.vmem [shape: f32[1,512], index: 0, kind: input, shape index: {}]   ;;  %s1197_s1 = inlined_call_operand.vmem [shape: f32[64,1], index: 1, kind: input, shape index: {}]   ;;  %s1198_s2 = inlined_call_operand.vmem [shape: f32[64,1], index: 2, kind: input, shape index: {}]   ;;  %s1199_s3 = inlined_call_operand.vmem [shape: bf16[64,64], index: 3, kind: input, shape index: {}]   ;;  %s1200_s4 = inlined_call_operand.vmem [shape: f32[64,1], index: 4, kind: input, shape index: {}]   ;;  %s1201_s5 = inlined_call_operand.vmem [shape: f32[64,1], index: 5, kind: input, shape index: {}]   ;;  %s1202_s6 = inlined_call_operand.<no memory space> [shape: f32[1,1], index: 6, kind: input, shape index: {}]   ;;  %s1203_s7 = inlined_call_operand.hbm [shape: f32[1,512], index: 7, kind: output, shape index: {}]  }
   0x1   :  { %v12_v0 = vstv %s1202_s6 }
   0x2   :  { %13 = vst [vmem:[#allocation2] sm:$0x1] %v12_v0 }
   0x3   :  { %14 = vsyncpa [#allocation4], 0 }
   0x4   :  { %16 = vsyncpa [#allocation4 + $0x1], 0  ;;  %s980_s26 = smov 0   ;;  %s982_s27 = smov 0  }
   0x5   :  { %s984_s28 = smov 0   ;;  %s986_s29 = smov 0  }
   0x6 LB: > { %s782_s6 = sadd.s32 4294967295, %s934_s29   ;;  %s783_s30 = sadd.s32 4294967294, %s934_s29   ;;  %s934_s29 = sphi %s986_s29, %s1209_s29   ;;  %s930_s28 = sphi %s984_s28, %s1208_s28   ;;  %s926_s27 = sphi %s982_s27, %s1207_s27   ;;  %s922_s26 = sphi %s980_s26, %s1206_s26  }
   0x7   : > { %s1003_s8 = sadd.s32 1, %s934_s29   ;;  %s181_s9 = sadd.s32 1, %s930_s28 }
   0x8   : > { %s178_s10 = ssub.s32 %s934_s29, %s1003_s8  ;;  %p191_p0 = scmp.ne.s32.totalorder %s930_s28, %s926_s27 }
   0x9   : > { %p179_p1 = scmp.eq.s32.totalorder %s178_s10, 0  ;;  %p192_p2 = scmp.eq.s32.totalorder %s782_s6, 1 }
   0xa   : > { %p197_p3 = scmp.ne.s32.totalorder %s926_s27, %s922_s26  ;;  %p198_p4 = scmp.eq.s32.totalorder %s783_s30, 1 }
   0xb   : > { %s1015_s11 = scalar_select %p179_p1, %s930_s28, %s181_s9  }
   0xc   : > { %p1017_p5 = por %p192_p2, %p191_p0  ;;  %p1021_p6 = por %p198_p4, %p197_p3 }
   0xd   : > { %p786_p7 = scmp.ge.s32.totalorder %s934_s29, 1  ;;  %p242_p8 = scmp.lt.s32.totalorder %s934_s29, 3 }
   0xf   : > { %p243_p9 = pnand %p786_p7, %p242_p8 }
  0x10   : > { %s1125_s18 = sshll.u32 (!%p243_p9), %s782_s6, 1  ;;  %s270_s15 = sand.u32 (!%p243_p9), 1, %s926_s27  }
  0x11   : > { %246 = sbr.rel (%p243_p9) target bundleno = 376 (0x178), region = 48  ;;  %p274_p10 = scmp.lt.s32.totalorder (!%p243_p9), %s1125_s18, 3 }
  0x12   : > { %s787_s16 = sshll.u32 (!%p243_p9), %s270_s15, 1  ;;  %s722_s20 = scalar_lea.hbm (!%p243_p9), %s1203_s7, %s1125_s18 }
  0x13   : > { %s272_s21 = scalar_lea.vmem (!%p243_p9), [#allocation3], %s787_s16  ;;  %s726_s6 = sshll.u32 (!%p243_p9), %s722_s20, 4  ;;  %s727_s6 = int_to_ptr.hbm [resolvable:$true] %s726_s6 }
  0x14   : > { %s712_s23 = scalar_lea.sflag (!%p243_p9), [#allocation4], %s270_s15  ;;  %s886_s24 = sshra.s32 (!%p243_p9), %s727_s6, 4  ;;  %s887_s24 = int_to_ptr.hbm [resolvable:$true] %s886_s24 }
  0x15   : > { %s892_s9 = scalar_lea.hbm (!%p243_p9), %s1203_s7, 4  ;;  %p893_p0 = scmp.lt.s32.totalorder (!%p243_p9), %s887_s24, %s1203_s7 }
  0x16   : > { %v356_v1 = vld [vmem:[%s1198_s2 + $0x30] sm:$0xff]  ;;  %v285_v3 = vld [vmem:[%s1197_s1 + $0x20] sm:$0xff]  ;;  %v936_v4 = vmov 0   ;;  %v357_v5 = vld [vmem:[%s1198_s2 + $0x38] sm:$0xff]  ;;  %s275_s19 = scalar_select %p274_p10, %s1125_s18, 3  ;;  %vm514_vm0 = vcmask 523264  }
  0x17   : > { %v287_v2 = vld [vmem:[%s1197_s1 + $0x30] sm:$0xff]  ;;  %871 = vset.pattern.permute.xlu2 %v936_v4  ;;  %870 = vset.pattern.permute.xlu1 %v936_v4  ;;  %v288_v6 = vld [vmem:[%s1197_s1 + $0x38] sm:$0xff]  ;;  %v286_v7 = vld [vmem:[%s1197_s1 + $0x28] sm:$0xff]  ;;  %vm703_vm1 = vcmask 1040384   ;;  %s888_s18 = scalar_lea.hbm %s887_s24, 2 }
  0x18   : > { %869 = vset.pattern.permute.xlu0 %v936_v4  ;;  %390 = vperm.xlu1 %870, %v356_v1   ;;  %v355_v8 = vld [vmem:[%s1198_s2 + $0x28] sm:$0xff]  ;;  %v354_v9 = vld [vmem:[%s1198_s2 + $0x20] sm:$0xff]  ;;  %v283_v10 = vld [vmem:[%s1197_s1 + $0x10] sm:$0xff]  ;;  %s276_s22 = scalar_lea.vmem %s1196_s0, %s275_s19  ;;  %p889_p11 = scmp.ne.s32.totalorder %s887_s24, %s888_s18 }
  0x19   : > { %321 = vperm.xlu0 %869, %v287_v2   ;;  %311 = vperm.xlu2 %871, %v285_v3   ;;  %v352_v11 = vld [vmem:[%s1198_s2 + $0x10] sm:$0xff]  ;;  %v284_v12 = vld [vmem:[%s1197_s1 + $0x18] sm:$0xff]  ;;  %v282_v14 = vld [vmem:[%s1197_s1 + $0x8] sm:$0xff]  ;;  %p894_p1 = scmp.lt.s32.totalorder %s892_s9, %s888_s18 }
  0x1a   : > { %v353_v13 = vld [vmem:[%s1198_s2 + $0x18] sm:$0xff]  ;;  %v350_v15 = vld [vmem:[%s1198_s2] sm:$0xff]  ;;  %v447_v18 = vld [vmem:[%s1200_s4 + $0x8] sm:$0xff]  ;;  %p890_p12 = pnand %p889_p11, %p1017_p5 }
  0x1b   : > { %v281_v16 = vld [vmem:[%s1197_s1] sm:$0xff]  ;;  %v351_v19 = vld [vmem:[%s1198_s2 + $0x8] sm:$0xff]  ;;  %v449_v20 = vld [vmem:[%s1200_s4 + $0x18] sm:$0xff]  ;;  %p895_p2 = por %p894_p1, %p893_p0 }
  0x1c   : > { %v446_v17 = vld [vmem:[%s1200_s4] sm:$0xff]  ;;  %v448_v22 = vld [vmem:[%s1200_s4 + $0x10] sm:$0xff]  ;;  %v602_v23 = vld [vmem:[%s1201_s5 + $0x8] sm:$0xff]  ;;  %p891_p13 = pneg %p890_p12 }
  0x1d   : > { %v450_v21 = vld [vmem:[%s1200_s4 + $0x20] sm:$0xff]  ;;  %v603_v24 = vld [vmem:[%s1201_s5 + $0x10] sm:$0xff]  ;;  %v604_v26 = vld [vmem:[%s1201_s5 + $0x18] sm:$0xff] }
  0x1e   : > { %v601_v25 = vld [vmem:[%s1201_s5] sm:$0xff]  ;;  %v452_v27 = vld [vmem:[%s1200_s4 + $0x30] sm:$0xff]  ;;  %v451_v28 = vld [vmem:[%s1200_s4 + $0x28] sm:$0xff]  ;;  %p896_p3 = pnand %p895_p2, %p891_p13 }
  0x1f   : > { %v453_v29 = vld [vmem:[%s1200_s4 + $0x38] sm:$0xff]  ;;  %v606_v30 = vld [vmem:[%s1201_s5 + $0x28] sm:$0xff]  ;;  %v605_v31 = vld [vmem:[%s1201_s5 + $0x20] sm:$0xff] }
  0x20   : > { %395 = vperm.xlu1 %870, %v357_v5   ;;  %v608_v32 = vld [vmem:[%s1201_s5 + $0x38] sm:$0xff]  ;;  %v691_v33 = vld [vmem:[#allocation2] sm:$0x1]  ;;  %v607_v34 = vld [vmem:[%s1201_s5 + $0x30] sm:$0xff] }
  0x21   : > { %326 = vperm.xlu0 %869, %v288_v6   ;;  %316 = vperm.xlu2 %871, %v286_v7   ;;  %v280_v36 = vld [vmem:[%s276_s22] sm:$0x3]  ;;  %s724_s22 = sshll.u32 %s272_s21, 4  ;;  %s725_s22 = int_to_ptr.vmem [resolvable:$true] %s724_s22 }
  0x22   : > { %v1132_v39 = vperm.slane %v280_v36, 0  ;;  %v1134_v40 = vperm.slane %v280_v36, 1 }
  0x28   : > { %385 = vperm.xlu1 %870, %v355_v8  }
  0x29   : > { %380 = vperm.xlu0 %869, %v354_v9   ;;  %301 = vperm.xlu2 %871, %v283_v10  }
  0x30   : > { %370 = vperm.xlu1 %870, %v352_v11  }
  0x31   : > { %306 = vperm.xlu0 %869, %v284_v12   ;;  %375 = vperm.xlu2 %871, %v353_v13  }
  0x38   : > { %296 = vperm.xlu1 %870, %v282_v14  }
  0x39   : > { %360 = vperm.xlu2 %871, %v350_v15   ;;  %291 = vperm.xlu0 %869, %v281_v16  }
  0x40   : > { %456 = vperm.xlu1 %870, %v446_v17  }
  0x41   : > { %461 = vperm.xlu2 %871, %v447_v18   ;;  %365 = vperm.xlu0 %869, %v351_v19  }
  0x48   : > { %471 = vperm.xlu1 %870, %v449_v20  }
  0x49   : > { %476 = vperm.xlu2 %871, %v450_v21   ;;  %466 = vperm.xlu0 %869, %v448_v22  }
  0x50   : > { %616 = vperm.xlu1 %870, %v602_v23  }
  0x51   : > { %621 = vperm.xlu2 %871, %v603_v24   ;;  %611 = vperm.xlu0 %869, %v601_v25  }
  0x58   : > { %626 = vperm.xlu1 %870, %v604_v26  }
  0x59   : > { %486 = vperm.xlu2 %871, %v452_v27   ;;  %481 = vperm.xlu0 %869, %v451_v28  }
  0x60   : > { %491 = vperm.xlu1 %870, %v453_v29  }
  0x61   : > { %636 = vperm.xlu2 %871, %v606_v30   ;;  %631 = vperm.xlu0 %869, %v605_v31  }
  0x68   : > { %646 = vperm.xlu1 %870, %v608_v32  }
  0x69   : > { %694 = vperm.xlu2 %871, %v691_v33   ;;  %641 = vperm.xlu0 %869, %v607_v34  }
  0x73   : > { %v312_v35 = vpop.permute.xlu2 %311 }
  0x74   : > { %v342_v58 = vmul.f32 %v1132_v39, %v312_v35  ;;  %v343_v59 = vmul.f32 %v1134_v40, %v312_v35 }
  0x7b   : > { %v317_v43 = vpop.permute.xlu2 %316 }
  0x7c   : > { %v344_v56 = vmul.f32 %v1132_v39, %v317_v43  ;;  %v345_v57 = vmul.f32 %v1134_v40, %v317_v43 }
  0x83   : > { %v302_v63 = vpop.permute.xlu2 %301 }
  0x84   : > { %v338_v11 = vmul.f32 %v1132_v39, %v302_v63  ;;  %v339_v12 = vmul.f32 %v1134_v40, %v302_v63 }
  0x8a   : > { %v391_v37 = vpop.permute.xlu1 %390 }
  0x8b   : > { %v322_v38 = vpop.permute.xlu0 %321  ;;  %v376_v19 = vpop.permute.xlu2 %375 }
  0x8c   : > { %v346_v41 = vmul.f32 %v1132_v39, %v322_v38  ;;  %v347_v42 = vmul.f32 %v1134_v40, %v322_v38 }
  0x8e   : > { %v410_v46 = vadd.f32 %v391_v37, %v346_v41  ;;  %v411_v47 = vadd.f32 %v391_v37, %v347_v42 }
  0x90   : > { %v426_v52 = vmax.f32 %v410_v46, 0.0  ;;  %v427_v54 = vmax.f32 %v411_v47, 0.0 }
  0x92   : > { %v396_v44 = vpop.permute.xlu1 %395 }
  0x93   : > { %v327_v45 = vpop.permute.xlu0 %326  ;;  %v361_v32 = vpop.permute.xlu2 %360 }
  0x94   : > { %v348_v48 = vmul.f32 %v1132_v39, %v327_v45  ;;  %v349_v49 = vmul.f32 %v1134_v40, %v327_v45 }
  0x96   : > { %v412_v50 = vadd.f32 %v396_v44, %v348_v48  ;;  %v413_v51 = vadd.f32 %v396_v44, %v349_v49  ;;  %v817_v48 = vld [vmem:[%s1199_s3] sm:$0xff]  ;;  %v820_v49 = vld [vmem:[%s1199_s3 + $0x18] sm:$0xff] }
  0x98   : > { %v428_v53 = vmax.f32 %v412_v50, 0.0  ;;  %v429_v55 = vmax.f32 %v413_v51, 0.0 }
  0x9a   : > { %v386_v60 = vpop.permute.xlu1 %385  ;;  %v436_v61 = vpack.c.bf16 %v428_v53, %v426_v52  ;;  %v437_v62 = vpack.c.bf16 %v429_v55, %v427_v54 }
  0x9b   : > { %v408_v0 = vadd.f32 %v386_v60, %v344_v56  ;;  %v409_v1 = vadd.f32 %v386_v60, %v345_v57  ;;  %v381_v2 = vpop.permute.xlu0 %380  ;;  %v462_v51 = vpop.permute.xlu2 %461 }
  0x9c   : > { %v406_v3 = vadd.f32 %v381_v2, %v342_v58  ;;  %v407_v4 = vadd.f32 %v381_v2, %v343_v59  ;;  %531 = vmatpush.bf16.msra.mxu0 %v436_v61  ;;  %821 = vmatpush.bf16.msra.mxu2 %v436_v61 }
  0x9d   : > { %v424_v5 = vmax.f32 %v408_v0, 0.0  ;;  %v425_v6 = vmax.f32 %v409_v1, 0.0  ;;  %560 = vmatpush.bf16.msra.mxu1 %v437_v62  ;;  %825 = vmatpush.bf16.msra.mxu3 %v437_v62 }
  0x9e   : > { %v422_v7 = vmax.f32 %v406_v3, 0.0  ;;  %v423_v8 = vmax.f32 %v407_v4, 0.0 }
  0xa0   : > { %v434_v9 = vpack.c.bf16 %v424_v5, %v422_v7  ;;  %v435_v10 = vpack.c.bf16 %v425_v6, %v423_v8 }
  0xa2   : > { %532 = vmatpush.bf16.msra.mxu0 %v434_v9  ;;  %822 = vmatpush.bf16.msra.mxu2 %v434_v9  ;;  %v371_v13 = vpop.permute.xlu1 %370 }
  0xa3   : > { %561 = vmatpush.bf16.msra.mxu1 %v435_v10  ;;  %826 = vmatpush.bf16.msra.mxu3 %v435_v10  ;;  %v307_v14 = vpop.permute.xlu0 %306  ;;  %v402_v15 = vadd.f32 %v371_v13, %v338_v11  ;;  %v403_v16 = vadd.f32 %v371_v13, %v339_v12  ;;  %v477_v56 = vpop.permute.xlu2 %476 }
  0xa4   : > { %v340_v17 = vmul.f32 %v1132_v39, %v307_v14  ;;  %v341_v18 = vmul.f32 %v1134_v40, %v307_v14 }
  0xa5   : > { %v418_v22 = vmax.f32 %v402_v15, 0.0  ;;  %v419_v23 = vmax.f32 %v403_v16, 0.0 }
  0xa6   : > { %v404_v20 = vadd.f32 %v376_v19, %v340_v17  ;;  %v405_v21 = vadd.f32 %v376_v19, %v341_v18 }
  0xa8   : > { %v420_v24 = vmax.f32 %v404_v20, 0.0  ;;  %v421_v25 = vmax.f32 %v405_v21, 0.0 }
  0xaa   : > { %v432_v26 = vpack.c.bf16 %v420_v24, %v418_v22  ;;  %v433_v27 = vpack.c.bf16 %v421_v25, %v419_v23  ;;  %v297_v31 = vpop.permute.xlu1 %296 }
  0xab   : > { %v292_v28 = vpop.permute.xlu0 %291  ;;  %v336_v33 = vmul.f32 %v1132_v39, %v297_v31  ;;  %v337_v34 = vmul.f32 %v1134_v40, %v297_v31  ;;  %v622_v63 = vpop.permute.xlu2 %621 }
  0xac   : > { %533 = vmatpush.bf16.msra.mxu0 %v432_v26  ;;  %823 = vmatpush.bf16.msra.mxu2 %v432_v26  ;;  %v334_v29 = vmul.f32 %v1132_v39, %v292_v28  ;;  %v335_v30 = vmul.f32 %v1134_v40, %v292_v28  ;;  %v819_v39 = vld [vmem:[%s1199_s3 + $0x10] sm:$0xff]  ;;  %v818_v40 = vld [vmem:[%s1199_s3 + $0x8] sm:$0xff] }
  0xad   : > { %562 = vmatpush.bf16.msra.mxu1 %v433_v27  ;;  %827 = vmatpush.bf16.msra.mxu3 %v433_v27 }
  0xae   : > { %v398_v35 = vadd.f32 %v361_v32, %v334_v29  ;;  %v399_v36 = vadd.f32 %v361_v32, %v335_v30 }
  0xb0   : > { %v414_v44 = vmax.f32 %v398_v35, 0.0  ;;  %v415_v45 = vmax.f32 %v399_v36, 0.0 }
  0xb2   : > { %v457_v50 = vpop.permute.xlu1 %456 }
  0xb3   : > { %v366_v37 = vpop.permute.xlu0 %365  ;;  %v487_v16 = vpop.permute.xlu2 %486 }
  0xb4   : > { %v400_v38 = vadd.f32 %v366_v37, %v336_v33  ;;  %v401_v41 = vadd.f32 %v366_v37, %v337_v34 }
  0xb6   : > { %v416_v42 = vmax.f32 %v400_v38, 0.0  ;;  %v417_v43 = vmax.f32 %v401_v41, 0.0 }
  0xb8   : > { %v430_v46 = vpack.c.bf16 %v416_v42, %v414_v44  ;;  %v431_v47 = vpack.c.bf16 %v417_v43, %v415_v45 }
  0xba   : > { %534 = vmatpush.bf16.msra.mxu0 %v430_v46  ;;  %824 = vmatpush.bf16.msra.mxu2 %v430_v46  ;;  %v472_v53 = vpop.permute.xlu1 %471 }
  0xbb   : > { %563 = vmatpush.bf16.msra.mxu1 %v431_v47  ;;  %828 = vmatpush.bf16.msra.mxu3 %v431_v47  ;;  %v467_v52 = vpop.permute.xlu0 %466 }
  0xbd   : > { %805 = vmatmul.msk.bf16.vlgmr.msra.gmra.mxu0 %vm514_vm0, %v817_v48  ;;  %807 = vmatmul.msk.bf16.vlgmr.msra.gmra.mxu2 %vm514_vm0, %v819_v39 }
  0xbe   : > { %809 = vmatmul.msk.bf16.vlgmr.msra.gmra.mxu1 %vm514_vm0, %v817_v48  ;;  %811 = vmatmul.msk.bf16.vlgmr.msra.gmra.mxu3 %vm514_vm0, %v819_v39 }
  0xc2   : > { %v617_v58 = vpop.permute.xlu1 %616 }
  0xc3   : > { %v612_v57 = vpop.permute.xlu0 %611 }
  0xca   : > { %v627_v4 = vpop.permute.xlu1 %626 }
  0xcb   : > { %v482_v0 = vpop.permute.xlu0 %481 }
  0xcd   : > { %806 = vmatmul.msk.bf16.gmra.mxu0 %vm514_vm0, %v818_v40  ;;  %808 = vmatmul.msk.bf16.gmra.mxu2 %vm514_vm0, %v820_v49 }
  0xce   : > { %810 = vmatmul.msk.bf16.gmra.mxu1 %vm514_vm0, %v818_v40  ;;  %812 = vmatmul.msk.bf16.gmra.mxu3 %vm514_vm0, %v820_v49 }
  0xd2   : > { %v492_v32 = vpop.permute.xlu1 %491 }
  0xd3   : > { %v632_v23 = vpop.permute.xlu0 %631 }
 0x13a   : > { %v536_v54 = vpop.f32.mrf.mxu0 }
 0x13b   : > { %v565_v55 = vpop.f32.mrf.mxu1  ;;  %v537_v7 = vadd.f32 %v536_v54, %v457_v50 }
 0x13c   : > { %v566_v10 = vadd.f32 %v565_v55, %v457_v50 }
 0x13d   : > { %v585_v14 = vmax.f32 %v537_v7, 0.0  ;;  %v647_v7 = vpop.permute.xlu1 %646 }
 0x13e   : > { %v586_v17 = vmax.f32 %v566_v10, 0.0 }
 0x13f   : > { %v649_v27 = vmul.f32 %v612_v57, %v585_v14 }
 0x140   : > { %v546_v59 = vpop.f32.mrf.mxu2  ;;  %v650_v33 = vmul.f32 %v612_v57, %v586_v17  ;;  %v637_v57 = vpop.permute.xlu2 %636 }
 0x141   : > { %v575_v60 = vpop.f32.mrf.mxu3  ;;  %v547_v20 = vadd.f32 %v546_v59, %v477_v56 }
 0x142   : > { %v538_v61 = vpop.f32.mrf.mxu0  ;;  %v576_v24 = vadd.f32 %v575_v60, %v477_v56 }
 0x143   : > { %v567_v62 = vpop.f32.mrf.mxu1  ;;  %v539_v2 = vadd.f32 %v538_v61, %v462_v51  ;;  %v593_v37 = vmax.f32 %v547_v20, 0.0 }
 0x144   : > { %v568_v5 = vadd.f32 %v567_v62, %v462_v51  ;;  %v594_v43 = vmax.f32 %v576_v24, 0.0 }
 0x145   : > { %v587_v12 = vmax.f32 %v539_v2, 0.0 }
 0x146   : > { %v588_v13 = vmax.f32 %v568_v5, 0.0 }
 0x147   : > { %v651_v21 = vmul.f32 %v617_v58, %v587_v12 }
 0x148   : > { %v548_v1 = vpop.f32.mrf.mxu2  ;;  %v652_v25 = vmul.f32 %v617_v58, %v588_v13  ;;  %v658_v58 = vmul.f32 %v632_v23, %v594_v43  ;;  %v695_v24 = vpop.permute.xlu2 %694 }
 0x149   : > { %v577_v3 = vpop.f32.mrf.mxu3  ;;  %v549_v28 = vadd.f32 %v548_v1, %v482_v0  ;;  %v665_v38 = vadd.f32 %v651_v21, %v649_v27  ;;  %v642_v1 = vpop.permute.xlu0 %641  ;;  %v697_v27 = vperm.slane %v695_v24, 0 }
 0x14a   : > { %v541_v6 = vpop.f32.mrf.mxu0  ;;  %v578_v34 = vadd.f32 %v577_v3, %v482_v0  ;;  %v678_v44 = vadd.f32 %v652_v25, %v650_v33 }
 0x14b   : > { %v542_v8 = vadd.f32 %v541_v6, %v467_v52  ;;  %v570_v9 = vpop.f32.mrf.mxu1  ;;  %v595_v47 = vmax.f32 %v549_v28, 0.0 }
 0x14c   : > { %v571_v11 = vadd.f32 %v570_v9, %v467_v52  ;;  %v596_v40 = vmax.f32 %v578_v34, 0.0  ;;  %v657_v52 = vmul.f32 %v632_v23, %v593_v37 }
 0x14d   : > { %v589_v15 = vmax.f32 %v542_v8, 0.0  ;;  %v659_v62 = vmul.f32 %v637_v57, %v595_v47 }
 0x14e   : > { %v590_v18 = vmax.f32 %v571_v11, 0.0  ;;  %v660_v2 = vmul.f32 %v637_v57, %v596_v40 }
 0x14f   : > { %v653_v29 = vmul.f32 %v622_v63, %v589_v15 }
 0x150   : > { %v551_v19 = vpop.f32.mrf.mxu2  ;;  %v654_v35 = vmul.f32 %v622_v63, %v590_v18 }
 0x151   : > { %v580_v22 = vpop.f32.mrf.mxu3  ;;  %v552_v41 = vadd.f32 %v551_v19, %v487_v16  ;;  %v666_v48 = vadd.f32 %v665_v38, %v653_v29 }
 0x152   : > { %v543_v26 = vpop.f32.mrf.mxu0  ;;  %v581_v45 = vadd.f32 %v580_v22, %v487_v16  ;;  %v679_v49 = vadd.f32 %v678_v44, %v654_v35 }
 0x153   : > { %v544_v30 = vadd.f32 %v543_v26, %v472_v53  ;;  %v572_v31 = vpop.f32.mrf.mxu1  ;;  %v597_v54 = vmax.f32 %v552_v41, 0.0 }
 0x154   : > { %v573_v36 = vadd.f32 %v572_v31, %v472_v53  ;;  %v598_v59 = vmax.f32 %v581_v45, 0.0 }
 0x155   : > { %v591_v42 = vmax.f32 %v544_v30, 0.0  ;;  %v661_v6 = vmul.f32 %v642_v1, %v597_v54  ;;  %v706_v30 = vlaneseq }
 0x156   : > { %v592_v46 = vmax.f32 %v573_v36, 0.0  ;;  %v662_v8 = vmul.f32 %v642_v1, %v598_v59 }
 0x157   : > { %v655_v39 = vmul.f32 %v627_v4, %v591_v42  ;;  %vm708_vm2 = vcmp.lt.s32.totalorder %v706_v30, 256 }
 0x158   : > { %v656_v50 = vmul.f32 %v627_v4, %v592_v46  ;;  %v553_v51 = vpop.f32.mrf.mxu2 }
 0x159   : > { %v667_v55 = vadd.f32 %v666_v48, %v655_v39  ;;  %v554_v56 = vadd.f32 %v553_v51, %v492_v32  ;;  %v582_v53 = vpop.f32.mrf.mxu3 }
 0x15a   : > { %v680_v60 = vadd.f32 %v679_v49, %v656_v50  ;;  %v583_v61 = vadd.f32 %v582_v53, %v492_v32 }
 0x15b   : > { %v668_v63 = vadd.f32 %v667_v55, %v657_v52  ;;  %v599_v0 = vmax.f32 %v554_v56, 0.0 }
 0x15c   : > { %v681_v3 = vadd.f32 %v680_v60, %v658_v58  ;;  %v600_v5 = vmax.f32 %v583_v61, 0.0 }
 0x15d   : > { %v669_v4 = vadd.f32 %v668_v63, %v659_v62  ;;  %v663_v10 = vmul.f32 %v647_v7, %v599_v0 }
 0x15e   : > { %v682_v9 = vadd.f32 %v681_v3, %v660_v2  ;;  %v664_v12 = vmul.f32 %v647_v7, %v600_v5 }
 0x15f   : > { %v670_v11 = vadd.f32 %v669_v4, %v661_v6 }
 0x160   : > { %v683_v13 = vadd.f32 %v682_v9, %v662_v8 }
 0x161   : > { %v671_v14 = vadd.f32 %v670_v11, %v663_v10 }
 0x162   : > { %v684_v15 = vadd.f32 %v683_v13, %v664_v12 }
 0x163   : > { %v672_v16 = vrot.slane %v671_v14, 4 }
 0x164   : > { %v685_v17 = vrot.slane %v684_v15, 4 }
 0x165   : > { %v673_v18 = vadd.f32 %v672_v16, %v671_v14 }
 0x166   : > { %v686_v19 = vadd.f32 %v685_v17, %v684_v15 }
 0x167   : > { %v674_v20 = vrot.slane %v673_v18, 2 }
 0x168   : > { %v687_v21 = vrot.slane %v686_v19, 2 }
 0x169   : > { %v675_v22 = vadd.f32 %v674_v20, %v673_v18 }
 0x16a   : > { %v688_v23 = vadd.f32 %v687_v21, %v686_v19 }
 0x16b   : > { %v676_v25 = vrot.slane %v675_v22, 1 }
 0x16c   : > { %v689_v26 = vrot.slane %v688_v23, 1 }
 0x16d   : > { %v677_v28 = vadd.f32 %v676_v25, %v675_v22 }
 0x16e   : > { %v690_v29 = vadd.f32 %v689_v26, %v688_v23 }
 0x16f   : > { %v698_v32 = vadd.f32 %v697_v27, %v677_v28 }
 0x170   : > { %v699_v31 = vadd.f32 %v697_v27, %v690_v29 }
 0x172   : > { %v702_v33 = vrot.slane %v699_v31, 7 }
 0x174   : > { %v704_v34 = vsel %vm703_vm1, %v698_v32, %v702_v33 }
 0x175   : > { %710 = vst.msk [vmem:[%s272_s21] sm:$0x3] %vm708_vm2, %v704_v34 }
 0x176   : > { %899 = shalt.err (!%p896_p3)
}
 0x177   : > { %829 = dma.vmem_to_hbm [thread:$0]  (%p1017_p5), %s725_s22, 32, %s727_s6, %s712_s23  }
 0x178 PF: > { %p835_p4 = scmp.ge.s32.totalorder %s934_s29, 2  ;;  %s738_s15 = sand.u32 1, %s922_s26  }
 0x179   : > { %s739_s16 = scalar_lea.sflag [#allocation4], %s738_s15 }
 0x17a   : > { %p832_p7 = pnand %p835_p4, %p1021_p6 }
 0x17c   : > { %p833_p8 = pneg %p832_p7 }
 0x17e   : > { %917 = dma.done.wait (%p833_p8), %s739_s16, 32  }
 0x17f   : > { %919 = vsyncadd (%p833_p8), %s739_s16, 4294967264  ;;  %p19_p9 = scmp.ge.s32.totalorder %s1003_s8, 4   ;;  %s1206_s26 = smov %s926_s27 }
 0x180   : > { %s1207_s27 = smov %s930_s28  ;;  %s1208_s28 = smov %s1015_s11 }
 0x181   : > { %s1209_s29 = smov %s1003_s8  ;;  %21 = sbr.rel (!%p19_p9) target bundleno = 6 (0x6), region = 83 }
 0x186   :  { %745 = vsyncpa [#allocation4], 1 }
 0x187   :  { %747 = vsyncpa [#allocation4 + $0x1], 1 }

</bundles_post_ra>
